<compile_context>
chip_gen: v5e
topology: v5e:2x2
jax: 0.10.0
libtpu: 0.0.40
codegen_flags: <defaults>
</compile_context>

<pallas_src>
import functools

import jax
import jax.numpy as jnp
from jax.experimental import pallas as pl
from jax.experimental.pallas import tpu as pltpu


def _top_down_attention_kernel(img_ref, v_ref, wi_ref, bi_ref, out_ref, acc_ref,
                               *, n_loc_valid):
    """One grid step == (TB batch elements) x (one Hc-wide chunk of the 2H axis).

    img_ref: (TB*Np, D)  image features (compute dtype, typically bf16)
    v_ref:   (TB, Hc)    per-batch gating chunk = (relu(q @ Wt + bt) * wl_row)[:, k]
    wi_ref:  (D, Hc)     fused image-branch weight chunk (compute dtype)
    bi_ref:  (1, Hc)     fused image-branch bias chunk (f32)
    out_ref: (TB, Np)    softmax attention over locations (lane-dense)
    acc_ref: (TB, Np)    f32 raw-logit accumulator, resident across the k axis
    """
    k = pl.program_id(1)
    tb, n_pad = out_ref.shape

    @pl.when(k == 0)
    def _():
        acc_ref[...] = jnp.zeros_like(acc_ref)

    # Image branch: one MXU matmul with M = TB*Np rows, f32 accumulation.
    image_fa = jnp.maximum(
        jnp.dot(img_ref[...], wi_ref[...], preferred_element_type=jnp.float32)
        + bi_ref[...],
        0.0,
    )                                                           # (TB*Np, Hc) f32

    # Gate by v and reduce the chunk lanes (VPU multiply + XLU lane reduce).
    # Np % 8 == 0, so this reshape is a sublane-aligned view (no relayout copy).
    gated = image_fa.reshape(tb, n_pad, -1) * v_ref[...][:, None, :]
    acc_ref[...] += jnp.sum(gated, axis=-1)                     # (TB, Np)

    @pl.when(k == pl.num_programs(1) - 1)
    def _():
        raw = acc_ref[...]
        if n_loc_valid != n_pad:
            # Padded locations would otherwise carry relu(bi)-driven garbage.
            col = jax.lax.broadcasted_iota(jnp.int32, raw.shape, 1)
            raw = jnp.where(col < n_loc_valid, raw, -jnp.inf)
        m = jnp.max(raw, axis=-1, keepdims=True)
        e = jnp.exp(raw - m)
        denom = jnp.sum(e, axis=-1, keepdims=True)
        # approx=True routes the divide to the otherwise-idle EUP slot.
        out_ref[...] = (e * pl.reciprocal(denom, approx=True)).astype(out_ref.dtype)


def _pick_batch_tile(batch, n_loc, target_rows):
    """Pick TB so it divides B, is == B or a multiple of 8 (sublane constraint on the
    (TB, Hc)/(TB, Np) blocks), and TB*Np gives an MXU-shaped M dimension."""
    if batch * n_loc <= 2 * target_rows:
        return batch  # small problem: everything in one grid step along batch
    want = -(-target_rows // n_loc)  # ceil
    candidates = [t for t in range(1, batch + 1)
                  if batch % t == 0 and (t == batch or t % 8 == 0)]
    for t in candidates:
        if t >= want:
            return t
    return candidates[-1]


def top_down_attention(image_feat, question_embedding, params, *,
                       compute_dtype=jnp.bfloat16, target_rows=512, hc_max=2048):
    B, N, D = image_feat.shape
    out_dtype = image_feat.dtype
    H = params["wi1"].shape[1]
    H2 = 2 * H

    # --- Host-side branch fusion -------------------------------------------------
    wi = jnp.concatenate([params["wi1"], params["wi2"]], axis=1)   # (D, 2H)
    bi = jnp.concatenate([params["bi1"], params["bi2"]], axis=1)   # (1, 2H)
    wt = jnp.concatenate([params["wt1"], params["wt2"]], axis=1)   # (T, 2H)
    bt = jnp.concatenate([params["bt1"], params["bt2"]], axis=1)   # (1, 2H)
    wl = jnp.concatenate([params["wl1"], params["wl2"]], axis=0)   # (2H, 1)
    # bl1 + bl2 adds the same constant to every location -> cancels exactly in softmax.

    # --- Question branch hoisted out of the kernel, fused with the transform ------
    v = jax.nn.relu(question_embedding @ wt + bt) * wl[:, 0][None, :]   # (B, 2H) f32

    # --- 2H reduction-axis chunking (caps per-step weight residency at D*Hc) ------
    Hc = H2 if H2 <= hc_max else hc_max            # hc_max is a multiple of 128/256
    H2p = -(-H2 // Hc) * Hc
    if H2p != H2:
        pad = H2p - H2
        wi = jnp.pad(wi, ((0, 0), (0, pad)))       # zero weight columns
        bi = jnp.pad(bi, ((0, 0), (0, pad)))
        v = jnp.pad(v, ((0, 0), (0, pad)))         # zero gate -> padded lanes add 0
    n_k = H2p // Hc

    # --- Pad the location axis to a sublane multiple so reshapes are copy-free ----
    Np = -(-N // 8) * 8
    if Np != N:
        image_feat = jnp.pad(image_feat, ((0, 0), (0, Np - N), (0, 0)))

    img2d = image_feat.reshape(B * Np, D).astype(compute_dtype)    # free host reshape
    wi = wi.astype(compute_dtype)
    bi = bi.astype(jnp.float32)
    v = v.astype(jnp.float32)

    TB = _pick_batch_tile(B, Np, target_rows)
    grid = (B // TB, n_k)

    invariant = (n_k == 1)   # weight chunk constant over the whole grid
    if invariant:
        wi_spec = pl.BlockSpec((D, Hc), lambda b, k: (0, k),
                               pipeline_mode=pl.Buffered(1))
        bi_spec = pl.BlockSpec((1, Hc), lambda b, k: (0, k),
                               pipeline_mode=pl.Buffered(1))
    else:
        wi_spec = pl.BlockSpec((D, Hc), lambda b, k: (0, k))
        bi_spec = pl.BlockSpec((1, Hc), lambda b, k: (0, k))

    in_specs = [
        pl.BlockSpec((TB * Np, D), lambda b, k: (b, 0)),            # image rows
        pl.BlockSpec((TB, Hc), lambda b, k: (b, k)),                # gating vector v
        wi_spec,
        bi_spec,
    ]
    out_spec = pl.BlockSpec((TB, Np), lambda b, k: (b, 0))

    # --- VMEM budget: derived from actual tile footprint, clamped to physical -----
    item = jnp.dtype(compute_dtype).itemsize
    est_bytes = (
        2 * TB * Np * D * item                                   # double-buffered img
        + (1 if invariant else 2) * (D * Hc * item + Hc * 4)     # wi + bi buffers
        + 2 * TB * Hc * 4                                        # v buffers
        + 2 * TB * Np * 4                                        # out buffers
        + TB * Np * 4                                            # acc scratch
        + 2 * TB * Np * Hc * 4                                   # live f32 intermediates
    )
    try:
        phys = int(pltpu.get_tpu_info().vmem_capacity_bytes)
    except Exception:
        phys = 64 * 1024 * 1024
    vmem_limit = int(min(max(32 * 1024 * 1024, 2 * est_bytes),
                         max(phys, 32 * 1024 * 1024)))

    kernel = functools.partial(_top_down_attention_kernel, n_loc_valid=N)

    att = pl.pallas_call(
        kernel,
        out_shape=jax.ShapeDtypeStruct((B, Np), jnp.float32),
        grid_spec=pltpu.PrefetchScalarGridSpec(
            num_scalar_prefetch=0,
            grid=grid,
            in_specs=in_specs,
            out_specs=out_spec,
            scratch_shapes=[pltpu.VMEM((TB, Np), jnp.float32)],
        ),
        compiler_params=pltpu.CompilerParams(
            dimension_semantics=("parallel", "arbitrary"),
            vmem_limit_bytes=vmem_limit,
        ),
    )(img2d, v, wi, bi)

    att = att[:, :N]
    # expand_as(image_feat): pure broadcast done by XLA outside the kernel so the
    # kernel writeback stays lane-dense and D_img-times smaller.
    return jnp.broadcast_to(att[:, :, None], (B, N, D)).astype(out_dtype)


def _reference(image_feat, question_embedding, params):
    """Pure-JAX reference mirroring the PyTorch forward (eval mode, softmax path)."""
    def raw(prefix):
        wi, bi = params[f"wi{prefix}"], params[f"bi{prefix}"]
        wt, bt = params[f"wt{prefix}"], params[f"bt{prefix}"]
        wl, bl = params[f"wl{prefix}"], params[f"bl{prefix}"]
        image_fa = jax.nn.relu(image_feat @ wi + bi)                 # (B, N, H)
        q_fa = jax.nn.relu(question_embedding @ wt + bt)             # (B, H)
        joint = image_fa * q_fa[:, None, :]
        return joint @ wl + bl                                       # (B, N, 1)

    r = raw(1) + raw(2)
    att = jax.nn.softmax(r, axis=1)                                  # (B, N, 1)
    return jnp.broadcast_to(att, image_feat.shape)


def _init_params(key, image_feat_dim, txt_dim, hidden):
    """Deterministic synthetic params. Stored as (in_dim, out_dim) (i.e. W^T of torch Linear)."""
    keys = jax.random.split(key, 12)

    def lin(k, fan_in, fan_out):
        bound = 1.0 / jnp.sqrt(fan_in)
        kw, kb = jax.random.split(k)
        w = jax.random.uniform(kw, (fan_in, fan_out), jnp.float32, -bound, bound)
        b = jax.random.uniform(kb, (1, fan_out), jnp.float32, -bound, bound)
        return w, b

    params = {}
    for i, pref in enumerate(("1", "2")):
        wi, bi = lin(keys[6 * i + 0], image_feat_dim, hidden)
        wt, bt = lin(keys[6 * i + 1], txt_dim, hidden)
        wl, bl = lin(keys[6 * i + 2], hidden, 1)
        params[f"wi{pref}"], params[f"bi{pref}"] = wi, bi
        params[f"wt{pref}"], params[f"bt{pref}"] = wt, bt
        params[f"wl{pref}"], params[f"bl{pref}"] = wl, bl
    return params


if __name__ == "__main__":
    B, N_LOC, IMG_DIM, TXT_DIM, HIDDEN = 2, 16, 32, 24, 32

    key = jax.random.PRNGKey(0)
    k_img, k_txt, k_par = jax.random.split(key, 3)

    image_feat = jax.random.normal(k_img, (B, N_LOC, IMG_DIM), jnp.float32)
    question_embedding = jax.random.normal(k_txt, (B, TXT_DIM), jnp.float32)
    params = _init_params(k_par, IMG_DIM, TXT_DIM, HIDDEN)

    out = top_down_attention(image_feat, question_embedding, params)
    out = jax.block_until_ready(out)

    ref = _reference(image_feat, question_embedding, params)
    assert out.shape == (B, N_LOC, IMG_DIM)
    # bf16 weights/activations (f32 accumulation) + approx reciprocal:
    # compare against the f32 reference at a bf16-appropriate tolerance.
    assert jnp.allclose(out, ref, atol=1e-2, rtol=1e-2)

    print("KERNEL_OK")
</pallas_src>

<mosaic_0001>
module attributes {stable_mosaic.version = 11 : i64} {
  func.func @_top_down_attention_kernel(%arg0: i32, %arg1: i32, %arg2: memref<32x32xbf16, #tpu.memory_space<vmem>>, %arg3: memref<2x64xf32, #tpu.memory_space<vmem>>, %arg4: memref<32x64xbf16, #tpu.memory_space<vmem>>, %arg5: memref<1x64xf32, #tpu.memory_space<vmem>>, %arg6: memref<2x16xf32, #tpu.memory_space<vmem>>, %arg7: memref<2x16xf32, #tpu.memory_space<vmem>>) attributes {dimension_semantics = [#tpu.dimension_semantics<parallel>, #tpu.dimension_semantics<arbitrary>], iteration_bounds = array<i64: 1, 1>, scalar_prefetch = 0 : i64, scratch_operands = 1 : i64, tpu.core_type = #tpu.core_type<tc>, window_params = [{transform_indices = @transform_0, window_bounds = array<i64: 32, 32>}, {transform_indices = @transform_1, window_bounds = array<i64: 2, 64>}, {pipeline_mode = #tpu.pipeline_mode<synchronous>, transform_indices = @transform_2, window_bounds = array<i64: 32, 64>}, {pipeline_mode = #tpu.pipeline_mode<synchronous>, transform_indices = @transform_3, window_bounds = array<i64: 1, 64>}, {transform_indices = @transform_4, window_bounds = array<i64: 2, 16>}]} {
    %c0_i32 = arith.constant 0 : i32
    %0 = arith.cmpi eq, %arg1, %c0_i32 : i32
    %1 = arith.extui %0 : i1 to i32
    %c0_i32_0 = arith.constant 0 : i32
    %2 = arith.cmpi ne, %1, %c0_i32_0 : i32
    scf.if %2 {
      %cst_16 = arith.constant 0.000000e+00 : f32
      %23 = vector.broadcast %cst_16 : f32 to vector<2x16xf32>
      %c0_17 = arith.constant 0 : index
      %c0_18 = arith.constant 0 : index
      %24 = vector.load %arg7[%c0_17, %c0_18] : memref<2x16xf32, #tpu.memory_space<vmem>>, vector<2x16xf32>
      tpu.vector_store %arg7[%c0_17, %c0_18], %23 {strides = array<i32>} : memref<2x16xf32, #tpu.memory_space<vmem>>, vector<2x16xf32>,
    } else {
    }
    %c0 = arith.constant 0 : index
    %c0_1 = arith.constant 0 : index
    %3 = vector.load %arg2[%c0, %c0_1] : memref<32x32xbf16, #tpu.memory_space<vmem>>, vector<32x32xbf16>
    %c0_2 = arith.constant 0 : index
    %c0_3 = arith.constant 0 : index
    %4 = vector.load %arg4[%c0_2, %c0_3] : memref<32x64xbf16, #tpu.memory_space<vmem>>, vector<32x64xbf16>
    %cst = arith.constant dense<0.000000e+00> : vector<32x64xf32>
    %5 = tpu.matmul %3, %4, %cst {dimension_numbers = #tpu.dot_dimension_numbers<[1], [0], [0], [1], [0, 0, 1, 1], [], []>} : vector<32x32xbf16>, vector<32x64xbf16>, vector<32x64xf32> -> vector<32x64xf32>
    %c0_4 = arith.constant 0 : index
    %c0_5 = arith.constant 0 : index
    %6 = vector.load %arg5[%c0_4, %c0_5] : memref<1x64xf32, #tpu.memory_space<vmem>>, vector<1x64xf32>
    %7 = vector.broadcast %6 : vector<1x64xf32> to vector<32x64xf32>
    %8 = arith.addf %5, %7 : vector<32x64xf32>
    %cst_6 = arith.constant 0.000000e+00 : f32
    %9 = vector.broadcast %cst_6 : f32 to vector<32x64xf32>
    %10 = arith.maximumf %8, %9 : vector<32x64xf32>
    %11 = vector.shape_cast %10 : vector<32x64xf32> to vector<2x16x64xf32>
    %c0_7 = arith.constant 0 : index
    %c0_8 = arith.constant 0 : index
    %12 = vector.load %arg3[%c0_7, %c0_8] : memref<2x64xf32, #tpu.memory_space<vmem>>, vector<2x64xf32>
    %13 = vector.shape_cast %12 : vector<2x64xf32> to vector<2x1x64xf32>
    %14 = vector.broadcast %13 : vector<2x1x64xf32> to vector<2x16x64xf32>
    %15 = arith.mulf %11, %14 : vector<2x16x64xf32>
    %c0_9 = arith.constant 0 : index
    %c0_10 = arith.constant 0 : index
    %16 = vector.load %arg7[%c0_9, %c0_10] : memref<2x16xf32, #tpu.memory_space<vmem>>, vector<2x16xf32>
    %cst_11 = arith.constant dense<0.000000e+00> : vector<2x16xf32>
    %17 = vector.multi_reduction <add>, %15, %cst_11 [2] : vector<2x16x64xf32> to vector<2x16xf32>
    %18 = arith.addf %16, %17 : vector<2x16xf32>
    %c0_12 = arith.constant 0 : index
    %c0_13 = arith.constant 0 : index
    %19 = vector.load %arg7[%c0_12, %c0_13] : memref<2x16xf32, #tpu.memory_space<vmem>>, vector<2x16xf32>
    tpu.vector_store %arg7[%c0_12, %c0_13], %18 {strides = array<i32>} : memref<2x16xf32, #tpu.memory_space<vmem>>, vector<2x16xf32>,
    %c0_i32_14 = arith.constant 0 : i32
    %20 = arith.cmpi eq, %arg1, %c0_i32_14 : i32
    %21 = arith.extui %20 : i1 to i32
    %c0_i32_15 = arith.constant 0 : i32
    %22 = arith.cmpi ne, %21, %c0_i32_15 : i32
    scf.if %22 {
      %c0_16 = arith.constant 0 : index
      %c0_17 = arith.constant 0 : index
      %23 = vector.load %arg7[%c0_16, %c0_17] : memref<2x16xf32, #tpu.memory_space<vmem>>, vector<2x16xf32>
      %cst_18 = arith.constant dense<0xFF800000> : vector<2xf32>
      %24 = vector.multi_reduction <maximumf>, %23, %cst_18 [1] : vector<2x16xf32> to vector<2xf32>
      %25 = vector.shape_cast %24 : vector<2xf32> to vector<2x1xf32>
      %26 = vector.broadcast %25 : vector<2x1xf32> to vector<2x16xf32>
      %27 = arith.subf %23, %26 : vector<2x16xf32>
      %28 = math.exp %27 : vector<2x16xf32>
      %cst_19 = arith.constant dense<0.000000e+00> : vector<2xf32>
      %29 = vector.multi_reduction <add>, %28, %cst_19 [1] : vector<2x16xf32> to vector<2xf32>
      %30 = vector.shape_cast %29 : vector<2xf32> to vector<2x1xf32>
      %31 = tpu.reciprocal %30 {approx = true} : vector<2x1xf32> -> vector<2x1xf32>
      %32 = vector.broadcast %31 : vector<2x1xf32> to vector<2x16xf32>
      %33 = arith.mulf %28, %32 : vector<2x16xf32>
      %c0_20 = arith.constant 0 : index
      %c0_21 = arith.constant 0 : index
      %34 = vector.load %arg6[%c0_20, %c0_21] : memref<2x16xf32, #tpu.memory_space<vmem>>, vector<2x16xf32>
      tpu.vector_store %arg6[%c0_20, %c0_21], %33 {strides = array<i32>} : memref<2x16xf32, #tpu.memory_space<vmem>>, vector<2x16xf32>,
    } else {
    }
    return
  }
  func.func @transform_0(%arg0: i32, %arg1: i32) -> (i32, i32) {
    %c0_i32 = arith.constant 0 : i32
    %c0_i32_0 = arith.constant 0 : i32
    return %arg0, %c0_i32 : i32, i32
  }
  func.func @transform_1(%arg0: i32, %arg1: i32) -> (i32, i32) {
    %c0_i32 = arith.constant 0 : i32
    return %arg0, %arg1 : i32, i32
  }
  func.func @transform_2(%arg0: i32, %arg1: i32) -> (i32, i32) {
    %c0_i32 = arith.constant 0 : i32
    %c0_i32_0 = arith.constant 0 : i32
    return %c0_i32, %arg1 : i32, i32
  }
  func.func @transform_3(%arg0: i32, %arg1: i32) -> (i32, i32) {
    %c0_i32 = arith.constant 0 : i32
    %c0_i32_0 = arith.constant 0 : i32
    return %c0_i32, %arg1 : i32, i32
  }
  func.func @transform_4(%arg0: i32, %arg1: i32) -> (i32, i32) {
    %c0_i32 = arith.constant 0 : i32
    %c0_i32_0 = arith.constant 0 : i32
    return %arg0, %c0_i32 : i32, i32
  }
}

</mosaic_0001>

<bundles_post_ra>
// kernel: tpu_custom_call.1
= control target key start
LH: loop header
LB: loop body
LE: loop exit
PB: predicated region body
PF: predicated region fallthrough
CT: control target
= control target key end

     0   :  { %9 = vsyncpa [#allocation4], 0  ;;  %s407_s0 = inlined_call_operand.hbm [shape: bf16[32,32], index: 0, kind: input, shape index: {}]   ;;  %s408_s1 = inlined_call_operand.hbm [shape: f32[2,64], index: 1, kind: input, shape index: {}]   ;;  %s409_s2 = inlined_call_operand.hbm [shape: bf16[32,64], index: 2, kind: input, shape index: {}]   ;;  %s410_s3 = inlined_call_operand.vmem [shape: f32[1,64], index: 3, kind: input, shape index: {}]   ;;  %s411_s4 = inlined_call_operand.hbm [shape: f32[2,16], index: 4, kind: output, shape index: {}]  }
   0x1   :  { %10 = vsyncpa [#allocation7], 0  ;;  %s30_s17 = sshll.u32 %s408_s1, 4  ;;  %s31_s17 = int_to_ptr.hbm [resolvable:$true] %s30_s17 }
   0x2   :  { %11 = vsyncpa [#allocation5], 0  ;;  %s351_s18 = smov [#allocation6]   ;;  %s16_s22 = sshll.u32 %s407_s0, 4  ;;  %s17_s22 = int_to_ptr.hbm [resolvable:$true] %s16_s22 }
   0x3   :  { %s32_s19 = sshll.u32 %s351_s18, 4  ;;  %s352_s23 = smov [#allocation3]   ;;  %s33_s19 = int_to_ptr.vmem [resolvable:$true] %s32_s19 }
   0x4   :  { %35 = dma.hbm_to_vmem [thread:$0]  %s31_s17, 32, %s33_s19, [#allocation7]  }
   0x5   :  { %s18_s24 = sshll.u32 %s352_s23, 4  ;;  %s353_s25 = smov 64   ;;  %s19_s24 = int_to_ptr.vmem [resolvable:$true] %s18_s24 }
   0x6   :  { %s354_s26 = smov 4   ;;  %s40_s1 = sshll.u32 %s409_s2, 4  ;;  %s41_s1 = int_to_ptr.hbm [resolvable:$true] %s40_s1 }
   0x7   :  { %24 = dma.hbm_to_vmem [thread:$0]  %s17_s22, 256, %s19_s24, [#allocation4], %s353_s25, %s353_s25, %s354_s26  }
   0x8   :  { %s355_s29 = smov [#allocation8]  }
   0x9   :  { %s42_s30 = sshll.u32 %s355_s29, 4  ;;  %s43_s30 = int_to_ptr.vmem [resolvable:$true] %s42_s30 }
   0xa   :  { %48 = dma.hbm_to_vmem [thread:$0]  %s41_s1, 256, %s43_s30, [#allocation7], %s353_s25, %s353_s25, %s354_s26  }
   0xb   :  { %345 = dma.done.wait [#allocation4], 256  }
   0xc   :  { %346 = vsyncadd [#allocation4], 4294967040 }
   0xd   :  { %347 = dma.done.wait [#allocation7], 288  }
   0xe   :  { %348 = vsyncadd [#allocation7], 4294967008  ;;  %v234_v0 = vld [vmem:[#allocation8 + $0x8] sm:$0xff]  ;;  %v233_v1 = vld [vmem:[#allocation8] sm:$0xff]  ;;  %vm104_vm0 = vcmask 261120   ;;  %vm146_vm1 = vcmask 523264   ;;  %v163_v30 = vlaneseq }
   0xf   :  { %117 = vmatpush.bf16.msra.mxu0 %v234_v0  ;;  %235 = vmatpush.bf16.msra.mxu1 %v234_v0  ;;  %v231_v2 = vld [vmem:[#allocation3] sm:$0xff]  ;;  %v232_v3 = vld [vmem:[#allocation3 + $0x8] sm:$0xff]  ;;  %v134_v4 = vld [vmem:[#allocation6] sm:$0x3]  ;;  %vm68_vm2 = vcmask 123904   ;;  %v356_v29 = vmov 0.0  }
  0x10   :  { %v244_v5 = vld [vmem:[%s410_s3] ss:$0 sm:$0xff]  ;;  %v136_v6 = vrot.slane %v134_v4, 1  ;;  %v137_v12 = vperm.slane %v134_v4, 0  ;;  %69 = vst.msk [vmem:[#allocation2] sm:$0x3] %vm68_vm2, %v356_v29 }
  0x11   :  { %v164_v33 = vand.u32 127, %v163_v30  ;;  %vm168_vm3 = vcmask 130112   ;;  %vm173_vm4 = vcmask 1041409   ;;  %s357_s3 = smov [#allocation9]   ;;  %s202_s8 = sshll.u32 %s411_s4, 4  ;;  %s203_s8 = int_to_ptr.hbm [resolvable:$true] %s202_s8 }
  0x12   :  { %v138_v11 = vperm.slane %v136_v6, 0  ;;  %s200_s5 = sshll.u32 %s357_s3, 4  ;;  %s201_s5 = int_to_ptr.vmem [resolvable:$true] %s200_s5 }
  0x13   :  { %118 = vmatpush.bf16.msra.mxu0 %v233_v1  ;;  %236 = vmatpush.bf16.msra.mxu1 %v233_v1  ;;  %v166_v34 = vadd.s32 4294967288, %v164_v33 }
  0x16   :  { %229 = vmatmul.msk.bf16.vlgmr.msra.gmra.mxu0 %vm104_vm0, %v231_v2  ;;  %230 = vmatmul.msk.bf16.vlgmr.msra.gmra.mxu1 %vm104_vm0, %v232_v3 }
  0x17   :  { %v145_v41 = vld [vmem:[#allocation2] sm:$0x3] }
  0x93   :  { %v120_v7 = vpop.f32.mrf.mxu0  ;;  %v125_v8 = vpop.f32.mrf.mxu1 }
  0x94   :  { %v121_v9 = vadd.f32 %v244_v5, %v120_v7  ;;  %v126_v10 = vadd.f32 %v244_v5, %v125_v8 }
  0x96   :  { %v130_v13 = vmax.f32 %v121_v9, 0.0  ;;  %v132_v14 = vmax.f32 %v126_v10, 0.0 }
  0x98   :  { %v143_v15 = vmul.f32 %v138_v11, %v132_v14  ;;  %v141_v16 = vmul.f32 %v137_v12, %v130_v13 }
  0x9a   :  { %v153_v17 = vsel %vm146_vm1, %v143_v15, 0.0  ;;  %v147_v18 = vsel %vm146_vm1, %v141_v16, 0.0 }
  0x9b   :  { %v127_v19 = vpop.f32.mrf.mxu1  ;;  %154 = vadd.xlane.f32.xlu1 %v153_v17  ;;  %v122_v20 = vpop.f32.mrf.mxu0  ;;  %148 = vadd.xlane.f32.xlu0 %v147_v18 }
  0x9c   :  { %v128_v21 = vadd.f32 %v244_v5, %v127_v19  ;;  %v123_v22 = vadd.f32 %v244_v5, %v122_v20 }
  0x9e   :  { %v133_v23 = vmax.f32 %v128_v21, 0.0  ;;  %v131_v24 = vmax.f32 %v123_v22, 0.0 }
  0xa0   :  { %v144_v25 = vmul.f32 %v138_v11, %v133_v23  ;;  %v142_v26 = vmul.f32 %v137_v12, %v131_v24 }
  0xa2   :  { %v156_v27 = vsel %vm146_vm1, %v144_v25, 0.0  ;;  %v150_v28 = vsel %vm146_vm1, %v142_v26, 0.0 }
  0xa3   :  { %157 = vadd.xlane.f32.xlu1 %v156_v27  ;;  %151 = vadd.xlane.f32.xlu0 %v150_v28 }
 0x10e   :  { %v155_v31 = vpop.xlane.xlu1 %154  ;;  %v149_v32 = vpop.xlane.xlu0 %148 }
 0x10f   :  { %v170_v37 = vperm.slane %v155_v31, %v164_v33  ;;  %v165_v38 = vperm.slane %v149_v32, %v164_v33 }
 0x116   :  { %v158_v35 = vpop.xlane.xlu1 %157  ;;  %v152_v36 = vpop.xlane.xlu0 %151 }
 0x117   :  { %v171_v39 = vperm.slane %v158_v35, %v166_v34  ;;  %v167_v40 = vperm.slane %v152_v36, %v166_v34 }
 0x119   :  { %v172_v42 = vsel %vm168_vm3, %v171_v39, %v170_v37  ;;  %v169_v43 = vsel %vm168_vm3, %v167_v40, %v165_v38 }
 0x11a   :  { %v174_v44 = vsel %vm173_vm4, %v172_v42, %v169_v43 }
 0x11b   :  { %v176_v45 = vadd.f32 %v174_v44, %v145_v41 }
 0x11d   :  { %178 = vst.msk [vmem:[#allocation2] sm:$0x3] %vm68_vm2, %v176_v45 }
 0x124   :  { %v182_v46 = vld [vmem:[#allocation2] sm:$0x3] }
 0x125   :  { %v183_v47 = vsel %vm68_vm2, %v182_v46, -inf }
 0x126   :  { %184 = vmax.xlane.f32.xlu2 %v183_v47 }
 0x199   :  { %v185_v48 = vpop.xlane.xlu2 %184 }
 0x19a   :  { %v186_v49 = vsub.f32 %v182_v46, %v185_v48 }
 0x19c   :  { %v187_v50 = vmul.f32 1.442695, %v186_v49 }
 0x19e   :  { %245 = vpow2.f32 %v187_v50 }
 0x1a4   :  { %v246_v51 = vpop.eup %245 }
 0x1a5   :  { %v189_v52 = vsel %vm68_vm2, %v246_v51, 0.0 }
 0x1a6   :  { %190 = vadd.xlane.f32.xlu2 %v189_v52 }
 0x219   :  { %v191_v53 = vpop.xlane.xlu2 %190 }
 0x21a   :  { %247 = vrcp.f32 %v191_v53 }
 0x220   :  { %v248_v54 = vpop.eup %247 }
 0x221   :  { %v193_v55 = vmul.f32 %v248_v54, %v246_v51 }
 0x223   :  { %194 = vst.msk [vmem:[#allocation9] sm:$0x3] %vm68_vm2, %v193_v55 }
 0x224   :  { %205 = dma.vmem_to_hbm [thread:$0]  %s201_s5, 32, %s203_s8, [#allocation5]  }
 0x225   :  { %349 = dma.done.wait [#allocation5], 32  }
 0x226   :  { %350 = vsyncadd [#allocation5], 4294967264 }
 0x227   :  { %210 = vsyncpa [#allocation4], 1 }
 0x228   :  { %211 = vsyncpa [#allocation7], 1 }
 0x229   :  { %212 = vsyncpa [#allocation5], 1 }

</bundles_post_ra>
